<compile_context>
chip_gen: v7x
topology: tpu7x:2x2x1
jax: 0.10.0
libtpu: 0.0.40
codegen_flags: <defaults>
</compile_context>

<pallas_src>
import functools
import math

import jax
import jax.numpy as jnp
from jax.experimental import pallas as pl
from jax.experimental.pallas import tpu as pltpu

VMEM_BUDGET_BYTES = 48 * 1024 * 1024  # explicit budget, fits v7x (64 MiB) / v6e / v5e


def _round_up(x, m):
    return (x + m - 1) // m * m


# ----------------------------------------------------------------------------
# Kernel 1: embeddings + LayerNorm + self-attention (Q = K = V), one batch row
# per grid step.
# ----------------------------------------------------------------------------
def fused_embed_attn_kernel(words_ref, pos_ref, doc_ref, gamma_ref, beta_ref,
                            mask_ref, seq_out_ref, ctx_sc, *, num_heads, head_dim):
    # words_ref/doc_ref: (S, H) bf16; pos_ref: (S, H) bf16; gamma/beta: (1, H) f32
    # mask_ref: (1, S) f32 raw 0/1 mask; seq_out_ref: (S, H) bf16; ctx_sc: (S, H) f32

    # --- embeddings sum + LayerNorm (eps = 1e-12), statistics in f32 ---
    x = (words_ref[...].astype(jnp.float32)
         + pos_ref[...].astype(jnp.float32)
         + doc_ref[...].astype(jnp.float32))                         # (S, H)
    mean = jnp.mean(x, axis=-1, keepdims=True)
    xc = x - mean
    var = jnp.mean(xc * xc, axis=-1, keepdims=True)
    h = xc * jax.lax.rsqrt(var + 1e-12)                              # EUP rsqrt
    h = h * gamma_ref[...] + beta_ref[...]
    # TODO(synk): hidden_dropout_prob dropout skipped (identity at inference).

    # --- additive attention mask, computed in-kernel from the raw mask ---
    add_mask = (1.0 - mask_ref[...]) * -10000.0                      # (1, S)

    scale = 1.0 / math.sqrt(head_dim)
    # Heads are sliced from the merged (S, H) layout; each head's context is written
    # into the (S, H) VMEM scratch (bounds per-head live ranges; no concatenate).
    for hd in range(num_heads):
        lo = hd * head_dim
        q32 = h[:, lo:lo + head_dim]                                 # (S, DH); Q == K == V
        qb = (q32 * scale).astype(jnp.bfloat16)                      # fold 1/sqrt(DH) into Q
        kb = q32.astype(jnp.bfloat16)
        # K^T expressed as a contraction (no XLU transpose); bf16 MXU, f32 accumulate.
        s = jax.lax.dot_general(qb, kb, (((1,), (1,)), ((), ())),
                                preferred_element_type=jnp.float32)  # (S, S)
        s = s + add_mask
        s = s - jnp.max(s, axis=-1, keepdims=True)
        p = jnp.exp(s)
        p = p / jnp.sum(p, axis=-1, keepdims=True)                   # exact divide
        # TODO(synk): attention_probs dropout skipped (identity at inference).
        ctx_sc[:, lo:lo + head_dim] = jnp.dot(p.astype(jnp.bfloat16), kb,
                                              preferred_element_type=jnp.float32)

    # Single merged lane-dense store of the (S, H) sequence output.
    seq_out_ref[...] = ctx_sc[...].astype(seq_out_ref.dtype)


def bert_encoder_forward(params, input_ids, attention_mask, token_type_ids, num_heads):
    B, S = input_ids.shape
    H = params["word_emb"].shape[1]
    DH = H // num_heads

    # Embedding gathers (glue) -- tables are stored in bf16, so the two (B, S, H)
    # intermediates written/re-read through HBM are half the size of the f32 version.
    words = jnp.take(params["word_emb"], input_ids, axis=0)          # (B, S, H) bf16
    pos = params["pos_emb"][:S]                                      # (S, H) bf16
    doc = jnp.take(params["doc_emb"], token_type_ids, axis=0)        # (B, S, H) bf16
    mask = attention_mask.astype(jnp.float32)[:, None, :]            # (B, 1, S) raw 0/1

    kernel = functools.partial(fused_embed_attn_kernel, num_heads=num_heads, head_dim=DH)
    seq_out = pl.pallas_call(
        kernel,
        out_shape=jax.ShapeDtypeStruct((B, S, H), jnp.bfloat16),
        grid_spec=pltpu.PrefetchScalarGridSpec(
            num_scalar_prefetch=0,
            grid=(B,),
            in_specs=[
                pl.BlockSpec((None, S, H), lambda b: (b, 0, 0)),     # words
                pl.BlockSpec((S, H), lambda b: (0, 0)),              # pos (grid-invariant)
                pl.BlockSpec((None, S, H), lambda b: (b, 0, 0)),     # doc
                pl.BlockSpec((1, H), lambda b: (0, 0)),              # LN gamma
                pl.BlockSpec((1, H), lambda b: (0, 0)),              # LN beta
                pl.BlockSpec((None, 1, S), lambda b: (b, 0, 0)),     # raw attention mask
            ],
            out_specs=pl.BlockSpec((None, S, H), lambda b: (b, 0, 0)),
            scratch_shapes=[pltpu.VMEM((S, H), jnp.float32)],        # merged ctx scratch
        ),
        compiler_params=pltpu.CompilerParams(
            dimension_semantics=("parallel",),
            vmem_limit_bytes=VMEM_BUDGET_BYTES),
    )(words, pos, doc, params["ln_gamma"], params["ln_beta"], mask)
    return seq_out


# ----------------------------------------------------------------------------
# Kernel 2: vocab-tiled LM head + fused masked-LM CE statistics.
# grid = (row_tiles, vocab_tiles); vocab axis innermost ("arbitrary") so the
# per-row online-logsumexp / label-logit accumulators stay VMEM-resident.
# ----------------------------------------------------------------------------
def lm_head_loss_kernel(h_ref, w_ref, b_ref, lbl_ref, lse_ref, ll_ref,
                        m_sc, l_sc, ll_sc, *, tv):
    # h_ref: (TM, H) bf16; w_ref: (TV, H) bf16; b_ref: (1, TV) f32; lbl_ref: (TM, 1) i32
    # lse_ref/ll_ref: (TM, 1) f32 outputs; m_sc/l_sc/ll_sc: (TM, 1) f32 scratch.
    j = pl.program_id(1)

    @pl.when(j == 0)
    def _():
        m_sc[...] = jnp.full_like(m_sc, -1e30)
        l_sc[...] = jnp.zeros_like(l_sc)
        ll_sc[...] = jnp.zeros_like(ll_sc)

    # logits tile = hidden @ dec_w_tile^T + bias_tile  (bf16 MXU, f32 accumulate)
    logits = jax.lax.dot_general(h_ref[...], w_ref[...], (((1,), (1,)), ((), ())),
                                 preferred_element_type=jnp.float32)  # (TM, TV)
    logits = logits + b_ref[...]

    # Label-logit gather inside this vocab tile (labels never hit padded entries).
    v_ids = jax.lax.broadcasted_iota(jnp.int32, logits.shape, 1) + j * tv
    hit = v_ids == lbl_ref[...]
    ll_sc[...] += jnp.sum(jnp.where(hit, logits, 0.0), axis=-1, keepdims=True)

    # Online logsumexp across vocab tiles (stats stay f32).
    m_prev = m_sc[...]
    m_new = jnp.maximum(m_prev, jnp.max(logits, axis=-1, keepdims=True))
    l_sc[...] = (l_sc[...] * jnp.exp(m_prev - m_new)
                 + jnp.sum(jnp.exp(logits - m_new), axis=-1, keepdims=True))
    m_sc[...] = m_new

    @pl.when(j == pl.num_programs(1) - 1)
    def _():
        lse_ref[...] = m_sc[...] + jnp.log(l_sc[...])
        ll_ref[...] = ll_sc[...]


def lm_head_logsumexp_and_label_logit(params, hidden2d, labels_flat):
    R, H = hidden2d.shape
    V = params["dec_w"].shape[0]

    TM = min(256, _round_up(R, 8))                  # 256-multiple rows at production scale
    TV = min(2048, _round_up(V, 128))               # lane-dense vocab tiles
    R_pad = _round_up(R, TM)
    V_pad = _round_up(V, TV)

    h_p = hidden2d if R_pad == R else jnp.pad(hidden2d, ((0, R_pad - R), (0, 0)))
    lbl = labels_flat.astype(jnp.int32)
    if R_pad != R:
        lbl = jnp.pad(lbl, (0, R_pad - R), constant_values=-1)
    lbl2d = lbl.reshape(R_pad, 1)

    w_p = params["dec_w"]                            # bf16 (V, H)
    if V_pad != V:
        w_p = jnp.pad(w_p, ((0, V_pad - V), (0, 0)))
    b_p = params["dec_b"]                            # f32 (1, V)
    if V_pad != V:
        # Padded vocab entries get a huge negative bias -> exp() underflows to 0.
        b_p = jnp.pad(b_p, ((0, 0), (0, V_pad - V)), constant_values=-1e9)

    lse, lbl_logit = pl.pallas_call(
        functools.partial(lm_head_loss_kernel, tv=TV),
        out_shape=(jax.ShapeDtypeStruct((R_pad, 1), jnp.float32),
                   jax.ShapeDtypeStruct((R_pad, 1), jnp.float32)),
        grid_spec=pltpu.PrefetchScalarGridSpec(
            num_scalar_prefetch=0,
            grid=(R_pad // TM, V_pad // TV),         # rows outer, vocab inner (reduction)
            in_specs=[
                pl.BlockSpec((TM, H), lambda i, j: (i, 0)),   # hidden rows (bf16)
                pl.BlockSpec((TV, H), lambda i, j: (j, 0)),   # decoder weight tile (bf16)
                pl.BlockSpec((1, TV), lambda i, j: (0, j)),   # decoder bias tile
                pl.BlockSpec((TM, 1), lambda i, j: (i, 0)),   # labels
            ],
            out_specs=(pl.BlockSpec((TM, 1), lambda i, j: (i, 0)),
                       pl.BlockSpec((TM, 1), lambda i, j: (i, 0))),
            scratch_shapes=[pltpu.VMEM((TM, 1), jnp.float32),
                            pltpu.VMEM((TM, 1), jnp.float32),
                            pltpu.VMEM((TM, 1), jnp.float32)],
        ),
        compiler_params=pltpu.CompilerParams(
            dimension_semantics=("parallel", "arbitrary"),
            vmem_limit_bytes=VMEM_BUDGET_BYTES),
    )(h_p, w_p, b_p, lbl2d)
    return lse[:R, 0], lbl_logit[:R, 0]


# ----------------------------------------------------------------------------
# Full MyBertForPreTraining forward. PyTorch returns only the loss; we also
# return the sequence output for verification.
# ----------------------------------------------------------------------------
def my_bert_for_pretraining_forward(params, input_ids, attention_mask, token_type_ids,
                                    masked_lm_labels, num_heads, word_weight=None):
    seq_out = bert_encoder_forward(params, input_ids, attention_mask,
                                   token_type_ids, num_heads)
    B, S, H = seq_out.shape
    hidden2d = seq_out.reshape(B * S, H)
    lse, lbl_logit = lm_head_logsumexp_and_label_logit(
        params, hidden2d, masked_lm_labels.reshape(-1))

    # CrossEntropyLoss(ignore_index=-1, weight=word_weight), reduction='mean'.
    labels_flat = masked_lm_labels.reshape(-1)
    valid = labels_flat != -1
    safe = jnp.where(valid, labels_flat, 0)
    nll = lse - lbl_logit                                            # (R,)
    if word_weight is None:
        w = jnp.ones_like(nll)
    else:
        w = word_weight.astype(jnp.float32)[safe]
    w = jnp.where(valid, w, 0.0)
    # Note: like PyTorch, this is 0/0 -> NaN if no label is valid in the batch.
    loss = jnp.sum(nll * w) / jnp.sum(w)
    return loss, seq_out


def init_params(key, vocab_size, max_pos, type_vocab, hidden, init_range=0.02):
    k1, k2, k3, k4 = jax.random.split(key, 4)
    f32 = jnp.float32
    return {
        # Embedding tables + decoder weight stored in bf16 (MXU-native, half the HBM traffic).
        "word_emb": (init_range * jax.random.normal(k1, (vocab_size, hidden), f32)).astype(jnp.bfloat16),
        "pos_emb": (init_range * jax.random.normal(k2, (max_pos, hidden), f32)).astype(jnp.bfloat16),
        "doc_emb": (init_range * jax.random.normal(k3, (type_vocab, hidden), f32)).astype(jnp.bfloat16),
        "ln_gamma": jnp.ones((1, hidden), f32),      # init_bert_weights: fill(1.0)
        "ln_beta": jnp.zeros((1, hidden), f32),      # init_bert_weights: zero_()
        # BertLMPredictionHead: fresh Linear(hidden -> vocab, bias=False) + zero bias param.
        "dec_w": (init_range * jax.random.normal(k4, (vocab_size, hidden), f32)).astype(jnp.bfloat16),
        "dec_b": jnp.zeros((1, vocab_size), f32),
    }


# ----------------------------------------------------------------------------
# Pure-JAX reference (f32 math on the same bf16-stored parameters) for checking.
# ----------------------------------------------------------------------------
def reference_forward(params, input_ids, attention_mask, token_type_ids,
                      masked_lm_labels, num_heads, word_weight=None):
    B, S = input_ids.shape
    H = params["word_emb"].shape[1]
    V = params["dec_w"].shape[0]
    DH = H // num_heads

    words = jnp.take(params["word_emb"].astype(jnp.float32), input_ids, axis=0)
    pos = params["pos_emb"].astype(jnp.float32)[:S][None]
    doc = jnp.take(params["doc_emb"].astype(jnp.float32), token_type_ids, axis=0)
    x = words + pos + doc
    mean = x.mean(-1, keepdims=True)
    var = ((x - mean) ** 2).mean(-1, keepdims=True)
    h = (x - mean) / jnp.sqrt(var + 1e-12) * params["ln_gamma"] + params["ln_beta"]

    add_mask = (1.0 - attention_mask.astype(jnp.float32))[:, None, None, :] * -10000.0
    hh = h.reshape(B, S, num_heads, DH).transpose(0, 2, 1, 3)        # (B, NH, S, DH)
    scores = jnp.einsum("bnqd,bnkd->bnqk", hh, hh) / math.sqrt(DH) + add_mask
    probs = jax.nn.softmax(scores, axis=-1)
    ctx = jnp.einsum("bnqk,bnkd->bnqd", probs, hh).transpose(0, 2, 1, 3).reshape(B, S, H)

    logits = ctx @ params["dec_w"].astype(jnp.float32).T + params["dec_b"][0]
    logits2d = logits.reshape(-1, V)
    labels_flat = masked_lm_labels.reshape(-1)
    valid = labels_flat != -1
    safe = jnp.where(valid, labels_flat, 0)
    logp = jax.nn.log_softmax(logits2d, axis=-1)
    nll = -jnp.take_along_axis(logp, safe[:, None], axis=-1)[:, 0]
    if word_weight is None:
        w = jnp.ones_like(nll)
    else:
        w = word_weight.astype(jnp.float32)[safe]
    w = jnp.where(valid, w, 0.0)
    loss = jnp.sum(nll * w) / jnp.sum(w)
    return ctx, loss


if __name__ == "__main__":
    # Small config consistent with BertConfig / the forward pass.
    B, S, H, NH = 2, 8, 32, 4
    VOCAB, MAX_POS, TYPE_VOCAB = 50, 16, 2

    key = jax.random.PRNGKey(0)
    kp, ki, kl = jax.random.split(key, 3)

    params = init_params(kp, VOCAB, MAX_POS, TYPE_VOCAB, H)

    input_ids = jax.random.randint(ki, (B, S), 0, VOCAB, dtype=jnp.int32)
    token_type_ids = jnp.zeros((B, S), dtype=jnp.int32)
    # attention_mask: 1 for real tokens, last two positions of batch 1 padded out.
    attention_mask = jnp.ones((B, S), dtype=jnp.int32).at[1, -2:].set(0)
    # masked_lm_labels with ignore_index=-1 on even positions.
    masked_lm_labels = jax.random.randint(kl, (B, S), 0, VOCAB, dtype=jnp.int32)
    masked_lm_labels = masked_lm_labels.at[:, ::2].set(-1)

    loss, seq_out = my_bert_for_pretraining_forward(
        params, input_ids, attention_mask, token_type_ids, masked_lm_labels, NH)
    loss, seq_out = jax.block_until_ready((loss, seq_out))

    ref_seq, ref_loss = reference_forward(
        params, input_ids, attention_mask, token_type_ids, masked_lm_labels, NH)
    ref_seq, ref_loss = jax.block_until_ready((ref_seq, ref_loss))

    seq_out_f32 = seq_out.astype(jnp.float32)
    assert seq_out.shape == (B, S, H)
    assert loss.shape == ()
    assert bool(jnp.all(jnp.isfinite(seq_out_f32)))
    assert bool(jnp.isfinite(loss))
    # bf16 MXU operands / bf16 storage -> loose-but-tight-enough tolerances vs f32 reference.
    assert bool(jnp.allclose(seq_out_f32, ref_seq, atol=5e-2, rtol=5e-2))
    assert bool(jnp.allclose(loss, ref_loss, atol=2e-2, rtol=2e-2))
    print("KERNEL_OK")
</pallas_src>

<mosaic_0001>
module attributes {stable_mosaic.version = 11 : i64} {
  func.func @fused_embed_attn_kernel(%arg0: i32, %arg1: memref<1x8x32xbf16, #tpu.memory_space<vmem>>, %arg2: memref<8x32xbf16, #tpu.memory_space<vmem>>, %arg3: memref<1x8x32xbf16, #tpu.memory_space<vmem>>, %arg4: memref<1x32xf32, #tpu.memory_space<vmem>>, %arg5: memref<1x32xf32, #tpu.memory_space<vmem>>, %arg6: memref<1x1x8xf32, #tpu.memory_space<vmem>>, %arg7: memref<1x8x32xbf16, #tpu.memory_space<vmem>>, %arg8: memref<8x32xf32, #tpu.memory_space<vmem>>) attributes {dimension_semantics = [#tpu.dimension_semantics<parallel>], iteration_bounds = array<i64: 2>, scalar_prefetch = 0 : i64, scratch_operands = 1 : i64, tpu.core_type = #tpu.core_type<tc>, window_params = [{transform_indices = @transform_0, window_bounds = array<i64: 1, 8, 32>}, {pipeline_mode = #tpu.pipeline_mode<synchronous>, transform_indices = @transform_1, window_bounds = array<i64: 8, 32>}, {transform_indices = @transform_2, window_bounds = array<i64: 1, 8, 32>}, {pipeline_mode = #tpu.pipeline_mode<synchronous>, transform_indices = @transform_3, window_bounds = array<i64: 1, 32>}, {pipeline_mode = #tpu.pipeline_mode<synchronous>, transform_indices = @transform_4, window_bounds = array<i64: 1, 32>}, {transform_indices = @transform_5, window_bounds = array<i64: 1, 1, 8>}, {transform_indices = @transform_6, window_bounds = array<i64: 1, 8, 32>}]} {
    %c0 = arith.constant 0 : index
    %c0_0 = arith.constant 0 : index
    %c0_1 = arith.constant 0 : index
    %0 = vector.load %arg1[%c0, %c0_0, %c0_1] : memref<1x8x32xbf16, #tpu.memory_space<vmem>>, vector<1x8x32xbf16>
    %1 = vector.shape_cast %0 : vector<1x8x32xbf16> to vector<8x32xbf16>
    %2 = arith.extf %1 : vector<8x32xbf16> to vector<8x32xf32>
    %c0_2 = arith.constant 0 : index
    %c0_3 = arith.constant 0 : index
    %3 = vector.load %arg2[%c0_2, %c0_3] : memref<8x32xbf16, #tpu.memory_space<vmem>>, vector<8x32xbf16>
    %4 = arith.extf %3 : vector<8x32xbf16> to vector<8x32xf32>
    %5 = arith.addf %2, %4 : vector<8x32xf32>
    %c0_4 = arith.constant 0 : index
    %c0_5 = arith.constant 0 : index
    %c0_6 = arith.constant 0 : index
    %6 = vector.load %arg3[%c0_4, %c0_5, %c0_6] : memref<1x8x32xbf16, #tpu.memory_space<vmem>>, vector<1x8x32xbf16>
    %7 = vector.shape_cast %6 : vector<1x8x32xbf16> to vector<8x32xbf16>
    %8 = arith.extf %7 : vector<8x32xbf16> to vector<8x32xf32>
    %9 = arith.addf %5, %8 : vector<8x32xf32>
    %cst = arith.constant dense<0.000000e+00> : vector<8xf32>
    %10 = vector.multi_reduction <add>, %9, %cst [1] : vector<8x32xf32> to vector<8xf32>
    %11 = vector.shape_cast %10 : vector<8xf32> to vector<8x1xf32>
    %cst_7 = arith.constant 3.200000e+01 : f32
    %12 = vector.broadcast %cst_7 : f32 to vector<8x1xf32>
    %13 = arith.divf %11, %12 : vector<8x1xf32>
    %14 = vector.broadcast %13 : vector<8x1xf32> to vector<8x32xf32>
    %15 = arith.subf %9, %14 : vector<8x32xf32>
    %16 = arith.mulf %15, %15 : vector<8x32xf32>
    %cst_8 = arith.constant dense<0.000000e+00> : vector<8xf32>
    %17 = vector.multi_reduction <add>, %16, %cst_8 [1] : vector<8x32xf32> to vector<8xf32>
    %18 = vector.shape_cast %17 : vector<8xf32> to vector<8x1xf32>
    %cst_9 = arith.constant 3.200000e+01 : f32
    %19 = vector.broadcast %cst_9 : f32 to vector<8x1xf32>
    %20 = arith.divf %18, %19 : vector<8x1xf32>
    %cst_10 = arith.constant 9.99999996E-13 : f32
    %21 = vector.broadcast %cst_10 : f32 to vector<8x1xf32>
    %22 = arith.addf %20, %21 : vector<8x1xf32>
    %23 = math.rsqrt %22 : vector<8x1xf32>
    %24 = vector.broadcast %23 : vector<8x1xf32> to vector<8x32xf32>
    %25 = arith.mulf %15, %24 : vector<8x32xf32>
    %c0_11 = arith.constant 0 : index
    %c0_12 = arith.constant 0 : index
    %26 = vector.load %arg4[%c0_11, %c0_12] : memref<1x32xf32, #tpu.memory_space<vmem>>, vector<1x32xf32>
    %27 = vector.broadcast %26 : vector<1x32xf32> to vector<8x32xf32>
    %28 = arith.mulf %25, %27 : vector<8x32xf32>
    %c0_13 = arith.constant 0 : index
    %c0_14 = arith.constant 0 : index
    %29 = vector.load %arg5[%c0_13, %c0_14] : memref<1x32xf32, #tpu.memory_space<vmem>>, vector<1x32xf32>
    %30 = vector.broadcast %29 : vector<1x32xf32> to vector<8x32xf32>
    %31 = arith.addf %28, %30 : vector<8x32xf32>
    %c0_15 = arith.constant 0 : index
    %c0_16 = arith.constant 0 : index
    %c0_17 = arith.constant 0 : index
    %32 = vector.load %arg6[%c0_15, %c0_16, %c0_17] : memref<1x1x8xf32, #tpu.memory_space<vmem>>, vector<1x1x8xf32>
    %33 = vector.shape_cast %32 : vector<1x1x8xf32> to vector<1x8xf32>
    %cst_18 = arith.constant 1.000000e+00 : f32
    %34 = vector.broadcast %cst_18 : f32 to vector<1x8xf32>
    %35 = arith.subf %34, %33 : vector<1x8xf32>
    %cst_19 = arith.constant -1.000000e+04 : f32
    %36 = vector.broadcast %cst_19 : f32 to vector<1x8xf32>
    %37 = arith.mulf %35, %36 : vector<1x8xf32>
    %38 = vector.extract_strided_slice %31 {offsets = [0, 0], sizes = [8, 8], strides = [1, 1]} : vector<8x32xf32> to vector<8x8xf32>
    %cst_20 = arith.constant 0.353553385 : f32
    %39 = vector.broadcast %cst_20 : f32 to vector<8x8xf32>
    %40 = arith.mulf %38, %39 : vector<8x8xf32>
    %41 = arith.truncf %40 : vector<8x8xf32> to vector<8x8xbf16>
    %42 = arith.truncf %38 : vector<8x8xf32> to vector<8x8xbf16>
    %cst_21 = arith.constant dense<0.000000e+00> : vector<8x8xf32>
    %43 = tpu.matmul %41, %42, %cst_21 {dimension_numbers = #tpu.dot_dimension_numbers<[1], [1], [0], [0], [0, 0, 1, 0], [], []>} : vector<8x8xbf16>, vector<8x8xbf16>, vector<8x8xf32> -> vector<8x8xf32>
    %44 = vector.broadcast %37 : vector<1x8xf32> to vector<8x8xf32>
    %45 = arith.addf %43, %44 : vector<8x8xf32>
    %cst_22 = arith.constant dense<0xFF800000> : vector<8xf32>
    %46 = vector.multi_reduction <maximumf>, %45, %cst_22 [1] : vector<8x8xf32> to vector<8xf32>
    %47 = vector.shape_cast %46 : vector<8xf32> to vector<8x1xf32>
    %48 = vector.broadcast %47 : vector<8x1xf32> to vector<8x8xf32>
    %49 = arith.subf %45, %48 : vector<8x8xf32>
    %50 = math.exp %49 : vector<8x8xf32>
    %cst_23 = arith.constant dense<0.000000e+00> : vector<8xf32>
    %51 = vector.multi_reduction <add>, %50, %cst_23 [1] : vector<8x8xf32> to vector<8xf32>
    %52 = vector.shape_cast %51 : vector<8xf32> to vector<8x1xf32>
    %53 = vector.broadcast %52 : vector<8x1xf32> to vector<8x8xf32>
    %54 = arith.divf %50, %53 : vector<8x8xf32>
    %55 = arith.truncf %54 : vector<8x8xf32> to vector<8x8xbf16>
    %cst_24 = arith.constant dense<0.000000e+00> : vector<8x8xf32>
    %56 = tpu.matmul %55, %42, %cst_24 {dimension_numbers = #tpu.dot_dimension_numbers<[1], [0], [0], [1], [0, 0, 1, 1], [], []>} : vector<8x8xbf16>, vector<8x8xbf16>, vector<8x8xf32> -> vector<8x8xf32>
    %c0_25 = arith.constant 0 : index
    %c0_26 = arith.constant 0 : index
    %57 = vector.load %arg8[%c0_25, %c0_26] : memref<8x32xf32, #tpu.memory_space<vmem>>, vector<8x8xf32>
    tpu.vector_store %arg8[%c0_25, %c0_26], %56 {strides = array<i32>} : memref<8x32xf32, #tpu.memory_space<vmem>>, vector<8x8xf32>,
    %58 = vector.extract_strided_slice %31 {offsets = [0, 8], sizes = [8, 8], strides = [1, 1]} : vector<8x32xf32> to vector<8x8xf32>
    %cst_27 = arith.constant 0.353553385 : f32
    %59 = vector.broadcast %cst_27 : f32 to vector<8x8xf32>
    %60 = arith.mulf %58, %59 : vector<8x8xf32>
    %61 = arith.truncf %60 : vector<8x8xf32> to vector<8x8xbf16>
    %62 = arith.truncf %58 : vector<8x8xf32> to vector<8x8xbf16>
    %cst_28 = arith.constant dense<0.000000e+00> : vector<8x8xf32>
    %63 = tpu.matmul %61, %62, %cst_28 {dimension_numbers = #tpu.dot_dimension_numbers<[1], [1], [0], [0], [0, 0, 1, 0], [], []>} : vector<8x8xbf16>, vector<8x8xbf16>, vector<8x8xf32> -> vector<8x8xf32>
    %64 = vector.broadcast %37 : vector<1x8xf32> to vector<8x8xf32>
    %65 = arith.addf %63, %64 : vector<8x8xf32>
    %cst_29 = arith.constant dense<0xFF800000> : vector<8xf32>
    %66 = vector.multi_reduction <maximumf>, %65, %cst_29 [1] : vector<8x8xf32> to vector<8xf32>
    %67 = vector.shape_cast %66 : vector<8xf32> to vector<8x1xf32>
    %68 = vector.broadcast %67 : vector<8x1xf32> to vector<8x8xf32>
    %69 = arith.subf %65, %68 : vector<8x8xf32>
    %70 = math.exp %69 : vector<8x8xf32>
    %cst_30 = arith.constant dense<0.000000e+00> : vector<8xf32>
    %71 = vector.multi_reduction <add>, %70, %cst_30 [1] : vector<8x8xf32> to vector<8xf32>
    %72 = vector.shape_cast %71 : vector<8xf32> to vector<8x1xf32>
    %73 = vector.broadcast %72 : vector<8x1xf32> to vector<8x8xf32>
    %74 = arith.divf %70, %73 : vector<8x8xf32>
    %75 = arith.truncf %74 : vector<8x8xf32> to vector<8x8xbf16>
    %cst_31 = arith.constant dense<0.000000e+00> : vector<8x8xf32>
    %76 = tpu.matmul %75, %62, %cst_31 {dimension_numbers = #tpu.dot_dimension_numbers<[1], [0], [0], [1], [0, 0, 1, 1], [], []>} : vector<8x8xbf16>, vector<8x8xbf16>, vector<8x8xf32> -> vector<8x8xf32>
    %c0_32 = arith.constant 0 : index
    %c8 = arith.constant 8 : index
    %77 = vector.load %arg8[%c0_32, %c8] : memref<8x32xf32, #tpu.memory_space<vmem>>, vector<8x8xf32>
    tpu.vector_store %arg8[%c0_32, %c8], %76 {strides = array<i32>} : memref<8x32xf32, #tpu.memory_space<vmem>>, vector<8x8xf32>,
    %78 = vector.extract_strided_slice %31 {offsets = [0, 16], sizes = [8, 8], strides = [1, 1]} : vector<8x32xf32> to vector<8x8xf32>
    %cst_33 = arith.constant 0.353553385 : f32
    %79 = vector.broadcast %cst_33 : f32 to vector<8x8xf32>
    %80 = arith.mulf %78, %79 : vector<8x8xf32>
    %81 = arith.truncf %80 : vector<8x8xf32> to vector<8x8xbf16>
    %82 = arith.truncf %78 : vector<8x8xf32> to vector<8x8xbf16>
    %cst_34 = arith.constant dense<0.000000e+00> : vector<8x8xf32>
    %83 = tpu.matmul %81, %82, %cst_34 {dimension_numbers = #tpu.dot_dimension_numbers<[1], [1], [0], [0], [0, 0, 1, 0], [], []>} : vector<8x8xbf16>, vector<8x8xbf16>, vector<8x8xf32> -> vector<8x8xf32>
    %84 = vector.broadcast %37 : vector<1x8xf32> to vector<8x8xf32>
    %85 = arith.addf %83, %84 : vector<8x8xf32>
    %cst_35 = arith.constant dense<0xFF800000> : vector<8xf32>
    %86 = vector.multi_reduction <maximumf>, %85, %cst_35 [1] : vector<8x8xf32> to vector<8xf32>
    %87 = vector.shape_cast %86 : vector<8xf32> to vector<8x1xf32>
    %88 = vector.broadcast %87 : vector<8x1xf32> to vector<8x8xf32>
    %89 = arith.subf %85, %88 : vector<8x8xf32>
    %90 = math.exp %89 : vector<8x8xf32>
    %cst_36 = arith.constant dense<0.000000e+00> : vector<8xf32>
    %91 = vector.multi_reduction <add>, %90, %cst_36 [1] : vector<8x8xf32> to vector<8xf32>
    %92 = vector.shape_cast %91 : vector<8xf32> to vector<8x1xf32>
    %93 = vector.broadcast %92 : vector<8x1xf32> to vector<8x8xf32>
    %94 = arith.divf %90, %93 : vector<8x8xf32>
    %95 = arith.truncf %94 : vector<8x8xf32> to vector<8x8xbf16>
    %cst_37 = arith.constant dense<0.000000e+00> : vector<8x8xf32>
    %96 = tpu.matmul %95, %82, %cst_37 {dimension_numbers = #tpu.dot_dimension_numbers<[1], [0], [0], [1], [0, 0, 1, 1], [], []>} : vector<8x8xbf16>, vector<8x8xbf16>, vector<8x8xf32> -> vector<8x8xf32>
    %c0_38 = arith.constant 0 : index
    %c16 = arith.constant 16 : index
    %97 = vector.load %arg8[%c0_38, %c16] : memref<8x32xf32, #tpu.memory_space<vmem>>, vector<8x8xf32>
    tpu.vector_store %arg8[%c0_38, %c16], %96 {strides = array<i32>} : memref<8x32xf32, #tpu.memory_space<vmem>>, vector<8x8xf32>,
    %98 = vector.extract_strided_slice %31 {offsets = [0, 24], sizes = [8, 8], strides = [1, 1]} : vector<8x32xf32> to vector<8x8xf32>
    %cst_39 = arith.constant 0.353553385 : f32
    %99 = vector.broadcast %cst_39 : f32 to vector<8x8xf32>
    %100 = arith.mulf %98, %99 : vector<8x8xf32>
    %101 = arith.truncf %100 : vector<8x8xf32> to vector<8x8xbf16>
    %102 = arith.truncf %98 : vector<8x8xf32> to vector<8x8xbf16>
    %cst_40 = arith.constant dense<0.000000e+00> : vector<8x8xf32>
    %103 = tpu.matmul %101, %102, %cst_40 {dimension_numbers = #tpu.dot_dimension_numbers<[1], [1], [0], [0], [0, 0, 1, 0], [], []>} : vector<8x8xbf16>, vector<8x8xbf16>, vector<8x8xf32> -> vector<8x8xf32>
    %104 = vector.broadcast %37 : vector<1x8xf32> to vector<8x8xf32>
    %105 = arith.addf %103, %104 : vector<8x8xf32>
    %cst_41 = arith.constant dense<0xFF800000> : vector<8xf32>
    %106 = vector.multi_reduction <maximumf>, %105, %cst_41 [1] : vector<8x8xf32> to vector<8xf32>
    %107 = vector.shape_cast %106 : vector<8xf32> to vector<8x1xf32>
    %108 = vector.broadcast %107 : vector<8x1xf32> to vector<8x8xf32>
    %109 = arith.subf %105, %108 : vector<8x8xf32>
    %110 = math.exp %109 : vector<8x8xf32>
    %cst_42 = arith.constant dense<0.000000e+00> : vector<8xf32>
    %111 = vector.multi_reduction <add>, %110, %cst_42 [1] : vector<8x8xf32> to vector<8xf32>
    %112 = vector.shape_cast %111 : vector<8xf32> to vector<8x1xf32>
    %113 = vector.broadcast %112 : vector<8x1xf32> to vector<8x8xf32>
    %114 = arith.divf %110, %113 : vector<8x8xf32>
    %115 = arith.truncf %114 : vector<8x8xf32> to vector<8x8xbf16>
    %cst_43 = arith.constant dense<0.000000e+00> : vector<8x8xf32>
    %116 = tpu.matmul %115, %102, %cst_43 {dimension_numbers = #tpu.dot_dimension_numbers<[1], [0], [0], [1], [0, 0, 1, 1], [], []>} : vector<8x8xbf16>, vector<8x8xbf16>, vector<8x8xf32> -> vector<8x8xf32>
    %c0_44 = arith.constant 0 : index
    %c24 = arith.constant 24 : index
    %117 = vector.load %arg8[%c0_44, %c24] : memref<8x32xf32, #tpu.memory_space<vmem>>, vector<8x8xf32>
    tpu.vector_store %arg8[%c0_44, %c24], %116 {strides = array<i32>} : memref<8x32xf32, #tpu.memory_space<vmem>>, vector<8x8xf32>,
    %c0_45 = arith.constant 0 : index
    %c0_46 = arith.constant 0 : index
    %118 = vector.load %arg8[%c0_45, %c0_46] : memref<8x32xf32, #tpu.memory_space<vmem>>, vector<8x32xf32>
    %119 = arith.truncf %118 : vector<8x32xf32> to vector<8x32xbf16>
    %c0_47 = arith.constant 0 : index
    %c0_48 = arith.constant 0 : index
    %c0_49 = arith.constant 0 : index
    %120 = vector.load %arg7[%c0_47, %c0_48, %c0_49] : memref<1x8x32xbf16, #tpu.memory_space<vmem>>, vector<1x8x32xbf16>
    %121 = vector.shape_cast %120 : vector<1x8x32xbf16> to vector<8x32xbf16>
    %122 = vector.shape_cast %119 : vector<8x32xbf16> to vector<1x8x32xbf16>
    tpu.vector_store %arg7[%c0_47, %c0_48, %c0_49], %122 {strides = array<i32>} : memref<1x8x32xbf16, #tpu.memory_space<vmem>>, vector<1x8x32xbf16>,
    return
  }
  func.func @transform_0(%arg0: i32) -> (i32, i32, i32) {
    %c0_i32 = arith.constant 0 : i32
    %c0_i32_0 = arith.constant 0 : i32
    %c0_i32_1 = arith.constant 0 : i32
    return %arg0, %c0_i32, %c0_i32_0 : i32, i32, i32
  }
  func.func @transform_1(%arg0: i32) -> (i32, i32) {
    %c0_i32 = arith.constant 0 : i32
    %c0_i32_0 = arith.constant 0 : i32
    %c0_i32_1 = arith.constant 0 : i32
    return %c0_i32, %c0_i32_0 : i32, i32
  }
  func.func @transform_2(%arg0: i32) -> (i32, i32, i32) {
    %c0_i32 = arith.constant 0 : i32
    %c0_i32_0 = arith.constant 0 : i32
    %c0_i32_1 = arith.constant 0 : i32
    return %arg0, %c0_i32, %c0_i32_0 : i32, i32, i32
  }
  func.func @transform_3(%arg0: i32) -> (i32, i32) {
    %c0_i32 = arith.constant 0 : i32
    %c0_i32_0 = arith.constant 0 : i32
    %c0_i32_1 = arith.constant 0 : i32
    return %c0_i32, %c0_i32_0 : i32, i32
  }
  func.func @transform_4(%arg0: i32) -> (i32, i32) {
    %c0_i32 = arith.constant 0 : i32
    %c0_i32_0 = arith.constant 0 : i32
    %c0_i32_1 = arith.constant 0 : i32
    return %c0_i32, %c0_i32_0 : i32, i32
  }
  func.func @transform_5(%arg0: i32) -> (i32, i32, i32) {
    %c0_i32 = arith.constant 0 : i32
    %c0_i32_0 = arith.constant 0 : i32
    %c0_i32_1 = arith.constant 0 : i32
    return %arg0, %c0_i32, %c0_i32_0 : i32, i32, i32
  }
  func.func @transform_6(%arg0: i32) -> (i32, i32, i32) {
    %c0_i32 = arith.constant 0 : i32
    %c0_i32_0 = arith.constant 0 : i32
    %c0_i32_1 = arith.constant 0 : i32
    return %arg0, %c0_i32, %c0_i32_0 : i32, i32, i32
  }
}

</mosaic_0001>

<bundles_post_ra>
// kernel: tpu_custom_call.1
= control target key start
LH: loop header
LB: loop body
LE: loop exit
PB: predicated region body
PF: predicated region fallthrough
CT: control target
= control target key end

     0   :  { %11 = vsyncpa [#allocation4], 0  ;;  %s1667_s0 = inlined_call_operand.hbm [shape: bf16[2,8,32], index: 0, kind: input, shape index: {}]   ;;  %s1668_s1 = inlined_call_operand.hbm [shape: bf16[8,32], index: 1, kind: input, shape index: {}]   ;;  %s1669_s2 = inlined_call_operand.hbm [shape: bf16[2,8,32], index: 2, kind: input, shape index: {}]   ;;  %s1670_s3 = inlined_call_operand.vmem [shape: f32[1,32], index: 3, kind: input, shape index: {}]   ;;  %s1671_s4 = inlined_call_operand.vmem [shape: f32[1,32], index: 4, kind: input, shape index: {}]   ;;  %s1672_s5 = inlined_call_operand.vmem [shape: f32[2,1,8], index: 5, kind: input, shape index: {}]   ;;  %s1673_s6 = inlined_call_operand.hbm [shape: bf16[2,8,32], index: 6, kind: output, shape index: {}]  }
   0x1   :  { %13 = vsyncpa [#allocation4 + $0x1], 0 }
   0x2   :  { %14 = vsyncpa [#allocation7], 0 }
   0x3   :  { %15 = vsyncpa [#allocation5], 0 }
   0x4   :  { %17 = vsyncpa [#allocation5 + $0x1], 0  ;;  %s1344_s21 = smov 0   ;;  %s1346_s22 = smov 0  }
   0x5   :  { %s1348_s23 = smov 0   ;;  %s1350_s24 = smov 0  }
   0x6 LB: > { %s1365_s25 = sadd.s32 1, %s1295_s24   ;;  %s30_s26 = sadd.s32 1, %s1291_s23  ;;  %s1295_s24 = sphi %s1350_s24, %s1698_s24   ;;  %s1291_s23 = sphi %s1348_s23, %s1697_s23   ;;  %s1287_s22 = sphi %s1346_s22, %s1696_s22   ;;  %s1283_s21 = sphi %s1344_s21, %s1695_s21  }
   0x7   : > { %s27_s27 = ssub.s32 %s1295_s24, %s1365_s25  ;;  %p37_p0 = scmp.ne.s32.totalorder %s1291_s23, %s1287_s22 }
   0x8   : > { %p28_p1 = scmp.eq.s32.totalorder %s27_s27, 0  ;;  %p38_p2 = scmp.eq.s32.totalorder %s1295_s24, 0 }
   0x9   : > { %p1071_p4 = scmp.lt.s32.totalorder %s1295_s24, 2  ;;  %s225_s29 = sand.u32 1, %s1295_s24  }
   0xa   : > { %s1376_s28 = scalar_select %p28_p1, %s1291_s23, %s30_s26  }
   0xb   : > { %p39_p5 = por %p38_p2, %p37_p0  ;;  %s227_s30 = sand.u32 1, %s1291_s23  }
   0xc   : > { %s1383_s7 = sshll.u32 %s227_s30, 2  ;;  %s959_s8 = sshll.u32 %s1295_s24, 6 }
   0xd   : > { %s1391_s11 = scalar_lea.hbm %s1667_s0, %s959_s8  ;;  %s229_s12 = scalar_lea.vmem [#allocation3], %s1383_s7 }
   0xe   : > { %s236_s13 = sshll.u32 %s229_s12, 4  ;;  %p1394_p6 = pnand %p1071_p4, %p39_p5  ;;  %s1398_s13 = int_to_ptr.vmem [resolvable:$true] %s236_s13 }
   0xf   : > { %s1400_s15 = scalar_lea.sflag [#allocation4], %s225_s29  ;;  %s1133_s16 = scalar_lea.hbm %s1391_s11, 64 }
  0x10   : > { %p1134_p7 = scmp.ne.s32.totalorder %s1391_s11, %s1133_s16  ;;  %p1135_p8 = pneg %p1394_p6 }
  0x11   : > { %s1138_s19 = scalar_lea.hbm %s1667_s0, 128  ;;  %p1139_p11 = scmp.lt.u32.totalorder %s1391_s11, %s1667_s0 }
  0x12   : > { %p1136_p9 = pnand %p1135_p8, %p1134_p7  ;;  %p1140_p12 = scmp.lt.u32.totalorder %s1138_s19, %s1133_s16 }
  0x13   : > { %p1142_p1 = scmp.lt.u32.totalorder %s1133_s16, %s1391_s11 }
  0x14   : > { %p1137_p10 = pneg %p1136_p9  ;;  %p1141_p13 = por %p1140_p12, %p1139_p11 }
  0x16   : > { %p1143_p2 = por %p1142_p1, %p1141_p13 }
  0x18   : > { %p1144_p4 = pnand %p1143_p2, %p1137_p10 }
  0x1a   : > { %1147 = shalt.err (!%p1144_p4)
}
  0x1b   : > { %s1148_s27 = scalar_lea.vmem %s1398_s13, 64  ;;  %s1297_s29 = smov [#allocation3]  }
  0x1c   : > { %p1149_p5 = scmp.ne.s32.totalorder %s1398_s13, %s1148_s27  ;;  %s1153_s30 = sshll.u32 %s1297_s29, 4  ;;  %s1154_s30 = int_to_ptr.vmem [resolvable:$false] %s1153_s30 }
  0x1d   : > { %s1155_s9 = scalar_lea.vmem %s1154_s30, 128  ;;  %p1156_p3 = scmp.lt.s32.totalorder %s1398_s13, %s1154_s30 }
  0x1e   : > { %p1151_p7 = pnand %p1149_p5, %p1135_p8  ;;  %p1157_p11 = scmp.lt.s32.totalorder %s1155_s9, %s1148_s27 }
  0x20   : > { %p1152_p9 = pneg %p1151_p7  ;;  %p1158_p12 = por %p1157_p11, %p1156_p3 }
  0x22   : > { %p1159_p13 = pnand %p1158_p12, %p1152_p9 }
  0x24   : > { %1162 = shalt.err (!%p1159_p13)
}
  0x25   : > { %1062 = dma.hbm_to_vmem [thread:$0]  (!%p1394_p6), %s1391_s11, 64, %s1398_s13, %s1400_s15  }
  0x26   : > { %s1429_s10 = sadd.s32 4294967295, %s1295_s24   ;;  %s954_s12 = sadd.s32 4294967294, %s1295_s24  }
  0x27   : > { %p43_p3 = scmp.ne.s32.totalorder %s1287_s22, %s1283_s21  ;;  %p1674_p10 = scmp.eq.s32.totalorder %s1429_s10, 0 }
  0x28   : > { %p182_p1 = scmp.eq.s32.totalorder %s1429_s10, 1  ;;  %p188_p2 = scmp.eq.s32.totalorder %s954_s12, 1 }
  0x29   : > { %p1438_p4 = por %p1674_p10, %p43_p3  ;;  %p955_p5 = scmp.ge.s32.totalorder %s1295_s24, 1 }
  0x2a   : > { %p1446_p7 = por %p182_p1, %p37_p0  ;;  %p1450_p9 = por %p188_p2, %p43_p3 }
  0x2b   : > { %s1680_s16 = scalar_select %p1438_p4, 1, 0 }
  0x2c   : > { %s1681_s11 = scalar_select %p1446_p7, 1, 0 }
  0x2d   : > { %s1682_s13 = scalar_select %p1450_p9, 1, 0 }
  0x2e   : > { %p195_p11 = scmp.lt.s32.totalorder %s1295_s24, 3  ;;  %s247_s17 = scalar_lea.vmem [#allocation8], %s1383_s7 }
  0x2f   : > { %s254_s18 = sshll.u32 %s247_s17, 4  ;;  %s1461_s26 = scalar_lea.hbm %s1669_s2, %s959_s8  ;;  %s255_s18 = int_to_ptr.vmem [resolvable:$true] %s254_s18 }
  0x30   : > { %p1463_p0 = pnand %p955_p5, %p195_p11  ;;  %s1298_s29 = smov [#allocation6]  }
  0x31   : > { %s1467_s30 = sshll.u32 %s1298_s29, 4  ;;  %s1163_s7 = scalar_lea.hbm %s1461_s26, 64  ;;  %s209_s30 = int_to_ptr.vmem [resolvable:$true] %s1467_s30 }
  0x32   : > { %s1683_s27 = scalar_select %p1463_p0, 1, 0 }
  0x33   : > { %p1164_p13 = scmp.ne.s32.totalorder %s1461_s26, %s1163_s7  ;;  %s1168_s12 = scalar_lea.hbm %s1669_s2, 128 }
  0x34   : > { %p1169_p2 = scmp.lt.u32.totalorder %s1461_s26, %s1669_s2  ;;  %p1170_p5 = scmp.lt.u32.totalorder %s1168_s12, %s1163_s7 }
  0x35   : > { %p1166_p3 = pnand %p1164_p13, %p1135_p8  ;;  %p1172_p10 = scmp.lt.u32.totalorder %s1163_s7, %s1461_s26 }
  0x36   : > { %p1171_p11 = por %p1170_p5, %p1169_p2 }
  0x37   : > { %p1167_p1 = pneg %p1166_p3 }
  0x38   : > { %p1173_p9 = por %p1172_p10, %p1171_p11 }
  0x3a   : > { %p1174_p7 = pnand %p1173_p9, %p1167_p1 }
  0x3c   : > { %1177 = shalt.err (!%p1174_p7)
}
  0x3d   : > { %s1178_s20 = scalar_lea.vmem %s255_s18, 64  ;;  %s1299_s29 = smov [#allocation8]  }
  0x3e   : > { %p1179_p12 = scmp.ne.s32.totalorder %s255_s18, %s1178_s20  ;;  %s1183_s8 = sshll.u32 %s1299_s29, 4  ;;  %s1184_s8 = int_to_ptr.vmem [resolvable:$false] %s1183_s8 }
  0x3f   : > { %s1185_s9 = scalar_lea.vmem %s1184_s8, 128  ;;  %p1186_p4 = scmp.lt.s32.totalorder %s255_s18, %s1184_s8 }
  0x40   : > { %p1181_p13 = pnand %p1179_p12, %p1135_p8  ;;  %p1187_p0 = scmp.lt.s32.totalorder %s1185_s9, %s1178_s20 }
  0x42   : > { %p1182_p3 = pneg %p1181_p13  ;;  %p1188_p2 = por %p1187_p0, %p1186_p4 }
  0x44   : > { %p1189_p5 = pnand %p1188_p2, %p1182_p3 }
  0x46   : > { %1192 = shalt.err (!%p1189_p5)
}
  0x47   : > { %1065 = dma.hbm_to_vmem [thread:$0]  (!%p1394_p6), %s1461_s26, 64, %s255_s18, %s1400_s15  }
  0x48   : > { %p1684_p8 = scmp.eq.s32.totalorder %s1429_s10, 0  ;;  %p1685_p10 = scmp.ne.s32.totalorder %s1683_s27, 0 }
  0x49   : > { %s1193_s19 = scalar_lea.hbm %s1668_s1, 64 }
  0x4a   : > { %p1686_p7 = pneg %p1685_p10  ;;  %p1194_p4 = scmp.ne.s32.totalorder %s1668_s1, %s1193_s19 }
  0x4b   : > { %p1200_p1 = scmp.lt.u32.totalorder %s1193_s19, %s1668_s1 }
  0x4c   : > { %p1497_p9 = pnand %p1686_p7, %p1684_p8 }
  0x4e   : > { %p1195_p0 = pneg %p1497_p9 }
  0x50   : > { %p1196_p6 = pnand %p1195_p0, %p1194_p4 }
  0x52   : > { %p1197_p12 = pneg %p1196_p6 }
  0x54   : > { %p1202_p11 = pnand %p1200_p1, %p1197_p12 }
  0x56   : > { %1205 = shalt.err (!%p1202_p11)
}
  0x57   : > { %s1206_s26 = scalar_lea.vmem %s209_s30, 64  ;;  %p1214_p5 = scmp.lt.s32.totalorder %s209_s30, %s209_s30 }
  0x58   : > { %p1207_p13 = scmp.ne.s32.totalorder %s209_s30, %s1206_s26  ;;  %p1215_p8 = scmp.lt.s32.totalorder %s1206_s26, %s1206_s26 }
  0x5a   : > { %p1209_p3 = pnand %p1207_p13, %p1195_p0  ;;  %p1216_p7 = por %p1215_p8, %p1214_p5 }
  0x5c   : > { %p1210_p2 = pneg %p1209_p3 }
  0x5e   : > { %p1217_p10 = pnand %p1216_p7, %p1210_p2 }
  0x60   : > { %1220 = shalt.err (!%p1217_p10)
}
  0x61   : > { %1058 = dma.hbm_to_vmem [thread:$0]  (!%p1497_p9), %s1668_s1, 64, %s209_s30, [#allocation7]  }
  0x62   : > { %p1688_p4 = scmp.ne.s32.totalorder %s1683_s27, 0 }
  0x63   : > { %s271_s9 = sand.u32 (!%p1688_p4), 1, %s1429_s10   ;;  %s273_s12 = sand.u32 (!%p1688_p4), 1, %s1287_s22  }
  0x64   : > { %269 = sbr.rel (%p1688_p4) target bundleno = 1879 (0x757), region = 44  ;;  %s1523_s17 = sshll.u32 (!%p1688_p4), %s273_s12, 2 }
  0x65   : > { %s272_s19 = scalar_lea.sflag (!%p1688_p4), [#allocation4], %s271_s9  ;;  %s275_s14 = scalar_lea.vmem (!%p1688_p4), [#allocation3], %s1523_s17 }
  0x66   : > { %p1689_p10 = scmp.ne.s32.totalorder (!%p1688_p4), %s1680_s16, 0 }
  0x6b   : > { %1266 = dma.done.wait (%p1689_p10), %s272_s19, 64  }
  0x6c   : > { %1268 = vsyncadd (%p1689_p10), %s272_s19, 4294967232  ;;  %p1690_p9 = scmp.eq.s32.totalorder %s1429_s10, 0 }
  0x6e   : > { %1270 = dma.done.wait (%p1690_p9), [#allocation7], 64   ;;  %p1691_p0 = pmov %p1690_p9 }
  0x6f   : > { %s288_s27 = scalar_lea.vmem [#allocation8], %s1523_s17 }
  0x70   : > { %1272 = vsyncadd (%p1691_p0), [#allocation7], 4294967232 }
  0x71   : > { %1274 = dma.done.wait (%p1689_p10), %s272_s19, 64  }
  0x72   : > { %1276 = vsyncadd (%p1689_p10), %s272_s19, 4294967232  ;;  %v329_v0 = vld [vmem:[%s275_s14] sm:$0xf]  ;;  %v331_v1 = vld [vmem:[#allocation6] sm:$0xf]  ;;  %vm337_vm0 = vcmask 261120   ;;  %v375_v31 = vlaneseq }
  0x73   : > { %v334_v2 = vld [vmem:[%s288_s27] sm:$0xf]  ;;  %v330_v3 = vunpack.c.l.bf16 %v329_v0  ;;  %v332_v4 = vunpack.c.l.bf16 %v331_v1  ;;  %v1300_v14 = vmov 0.0   ;;  %vm1301_vm1 = vmmov 0   ;;  %v967_v19 = vld [vmem:[%s1670_s3] ss:$0 sm:$0xff] }
  0x74   : > { %v335_v5 = vunpack.c.l.bf16 %v334_v2  ;;  %997 = vmatprep.subr.bf16.mxu0 %v1300_v14  ;;  %1003 = vmatprep.subr.bf16.mxu1 %v1300_v14  ;;  %v968_v21 = vld [vmem:[%s1671_s4] ss:$0 sm:$0xff]  ;;  %vm380_vm2 = vcmask 64512   ;;  %vm442_vm3 = vcmask 1043456   ;;  %s1302_s15 = smov 120   ;;  %s1303_s18 = smov 104  }
  0x75   : > { %v333_v6 = vadd.f32 %v332_v4, %v330_v3  ;;  %999 = vmatprep.mubr.msk.bf16.mxu0 %vm1301_vm1, %v1300_v14  ;;  %1005 = vmatprep.mubr.msk.bf16.mxu1 %vm1301_vm1, %v1300_v14  ;;  %p325_p6 = scmp.lt.s32.totalorder %s1429_s10, 1  ;;  %v376_v34 = vshrl.u32 %v375_v31, 7  ;;  %s1304_s19 = smov 112   ;;  %vm599_vm4 = vcmask 130112   ;;  %vm712_vm5 = vcmask 195712  }
  0x76   : > { %s1305_s14 = smov 8   ;;  %s1306_s27 = smov 16   ;;  %vm825_vm6 = vcmask 261312   ;;  %vm829_vm7 = vcmask 257024  }
  0x77   : > { %v336_v7 = vadd.f32 %v335_v5, %v333_v6  ;;  %s326_s26 = scalar_select %p325_p6, %s1429_s10, 1  ;;  %v377_v36 = vsub.s32 0, %v376_v34 }
  0x78   : > { %s1307_s16 = smov 24   ;;  %s978_s30 = sshll.u32 %s1429_s10, 6 }
  0x79   : > { %v338_v8 = vsel %vm337_vm0, %v336_v7, 0.0  ;;  %s327_s9 = scalar_lea.vmem %s1672_s5, %s326_s26  ;;  %s324_s7 = scalar_lea.vmem [#allocation9], %s1523_s17 }
  0x7a   : > { %339 = vadd.xlane.f32.xlu0 %v338_v8  ;;  %v368_v32 = vld [vmem:[%s327_s9] sm:$0x1]  ;;  %s845_s20 = sshll.u32 %s324_s7, 4  ;;  %s1622_s26 = scalar_lea.hbm %s1673_s6, %s978_s30  ;;  %s1624_s20 = int_to_ptr.vmem [resolvable:$true] %s845_s20 }
  0x7b   : > { %v369_v33 = vsub.f32 1.0, %v368_v32  ;;  %s832_s29 = scalar_lea.sflag [#allocation5], %s273_s12  ;;  %s1221_s8 = scalar_lea.vmem %s1624_s20, 64 }
  0x7c   : > { %p1222_p12 = scmp.ne.s32.totalorder %s1624_s20, %s1221_s8  ;;  %p1692_p1 = scmp.ne.s32.totalorder %s1681_s11, 0 }
  0x7d   : > { %v370_v35 = vmul.f32 -10000.0, %v369_v33  ;;  %s1308_s10 = smov [#allocation9]  }
  0x7e   : > { %p1223_p11 = pnand %p1222_p12, %p1692_p1  ;;  %s1225_s17 = sshll.u32 %s1308_s10, 4  ;;  %s1226_s17 = int_to_ptr.vmem [resolvable:$false] %s1225_s17 }
  0x7f   : > { %v1567_v37 = vrot.slane %v370_v35, %v377_v36  ;;  %s1227_s9 = scalar_lea.vmem %s1226_s17, 128  ;;  %p1228_p3 = scmp.lt.s32.totalorder %s1624_s20, %s1226_s17 }
  0x80   : > { %p1224_p13 = pneg %p1223_p11  ;;  %p1229_p2 = scmp.lt.s32.totalorder %s1227_s9, %s1221_s8 }
  0x82   : > { %p1230_p5 = por %p1229_p2, %p1228_p3 }
  0x84   : > { %p1231_p8 = pnand %p1230_p5, %p1224_p13 }
 0x107   : > { %v340_v9 = vpop.xlane.xlu0 %339 }
 0x108   : > { %v342_v10 = vmul.f32 0.03125, %v340_v9 }
 0x10a   : > { %v343_v11 = vsub.f32 %v336_v7, %v342_v10 }
 0x10c   : > { %v344_v12 = vmul.f32 %v343_v11, %v343_v11 }
 0x10e   : > { %v345_v13 = vsel %vm337_vm0, %v344_v12, 0.0 }
 0x10f   : > { %346 = vadd.xlane.f32.xlu0 %v345_v13 }
 0x19c   : > { %v347_v15 = vpop.xlane.xlu0 %346 }
 0x19d   : > { %v348_v16 = vmul.f32 0.03125, %v347_v15 }
 0x19f   : > { %v349_v17 = vadd.f32 1e-12, %v348_v16 }
 0x1a1   : > { %1115 = vrsqrt.f32 %v349_v17 }
 0x1ab   : > { %v1116_v18 = vpop.eup %1115 }
 0x1ac   : > { %v351_v20 = vmul.f32 %v1116_v18, %v343_v11 }
 0x1ae   : > { %v359_v22 = vmul.f32 %v967_v19, %v351_v20 }
 0x1b0   : > { %v367_v23 = vadd.f32 %v968_v21, %v359_v22 }
 0x1b2   : > { %v373_v24 = vpack.c.bf16 %v367_v23, %v367_v23  ;;  %v371_v27 = vmul.f32 0.35355338, %v367_v23 }
 0x1b4   : > { %490 = vrot.lane.b32.xlu0 %v373_v24, %s1302_s15  ;;  %v385_v25 = vsel %vm380_vm2, %v373_v24, 0  ;;  %v443_v26 = vsel %vm442_vm3, %v373_v24, 0  ;;  %v372_v28 = vpack.c.bf16 %v371_v27, %v371_v27 }
 0x1b5   : > { %998 = vmatpush3.bf16.xpose.msra.mxu0 %v385_v25  ;;  %1004 = vmatpush3.bf16.msra.mxu1 %v443_v26 }
 0x1b6   : > { %1015 = vmatprep.subr.bf16.mxu0 %v1300_v14  ;;  %1009 = vmatprep.subr.bf16.mxu1 %v1300_v14 }
 0x1b8   : > { %716 = vrot.lane.b32.xlu0 %v373_v24, %s1303_s18 }
 0x1bc   : > { %1000 = vmatmul.mubr.msk.bf16.vlgmr.msra.gmra.mrb[0].mxu0 %vm380_vm2, %v372_v28 }
 0x1bd   : > { %1017 = vmatprep.mubr.msk.bf16.mxu0 %vm1301_vm1, %v1300_v14 }
 0x226   : > { %v491_v29 = vpop.permute.xlu0 %490 }
 0x227   : > { %v553_v30 = vsel %vm442_vm3, %v491_v29, 0  ;;  %v496_v54 = vsel %vm380_vm2, %v491_v29, 0 }
 0x228   : > { %1016 = vmatpush3.bf16.msra.mxu0 %v553_v30 }
 0x229   : > { %1027 = vmatprep.subr.bf16.mxu0 %v1300_v14 }
 0x22a   : > { %v1587_v57 = vpop.permute.xlu0 %716 }
 0x22b   : > { %v722_v59 = vsel %vm380_vm2, %v1587_v57, 0 }
 0x28f   : > { %v421_v38 = vpop.f32.mrb[0].mxu0 }
 0x290   : > { %v422_v39 = vadd.f32 %v421_v38, %v1567_v37  ;;  %v1001_v40 = vpop.f32.mrb[1].mxu0 }
 0x291   : > { %v424_v41 = vpop.f32.mrb[2].mxu0 }
 0x292   : > { %v1002_v42 = vpop.f32.mrb[3].mxu0  ;;  %v427_v43 = vsel %vm380_vm2, %v422_v39, -inf }
 0x293   : > { %428 = vmax.xlane.f32.xlu1 %v427_v43 }
 0x320   : > { %v429_v44 = vpop.xlane.xlu1 %428 }
 0x321   : > { %v430_v45 = vsub.f32 %v422_v39, %v429_v44 }
 0x323   : > { %v431_v46 = vmul.f32 1.442695, %v430_v45  ;;  %v779_v45 = vsel %vm442_vm3, %v1587_v57, 0 }
 0x325   : > { %1117 = vpow2.f32 %v431_v46 }
 0x32f   : > { %v1118_v47 = vpop.eup %1117 }
 0x330   : > { %v433_v48 = vsel %vm380_vm2, %v1118_v47, 0.0 }
 0x331   : > { %434 = vadd.xlane.f32.xlu1 %v433_v48 }
 0x342   : > { %487 = vrot.lane.b32.xlu1 %v372_v28, %s1302_s15 }
 0x346   : > { %603 = vrot.lane.b32.xlu1 %v373_v24, %s1304_s19 }
 0x34a   : > { %601 = vrot.lane.b32.xlu1 %v372_v28, %s1304_s19 }
 0x34e   : > { %714 = vrot.lane.b32.xlu1 %v372_v28, %s1303_s18 }
 0x3be   : > { %v435_v49 = vpop.xlane.xlu1 %434 }
 0x3bf   : > { %1119 = vrcp.f32 %v435_v49 }
 0x3c2   : > { %v488_v53 = vpop.permute.xlu1 %487 }
 0x3c6   : > { %v1579_v55 = vpop.permute.xlu1 %603 }
 0x3c7   : > { %v609_v56 = vsel %vm380_vm2, %v1579_v55, 0  ;;  %v666_v40 = vsel %vm442_vm3, %v1579_v55, 0 }
 0x3c9   : > { %v1120_v50 = vpop.eup %1119 }
 0x3ca   : > { %v437_v51 = vmul.f32 %v1120_v50, %v1118_v47  ;;  %v602_v58 = vpop.permute.xlu1 %601 }
 0x3cc   : > { %v438_v52 = vpack.c.bf16 %v437_v51, %v437_v51 }
 0x3ce   : > { %1006 = vmatmul.mubr.msk.bf16.vlgmr.msra.gmra.mrb[0].mxu1 %vm380_vm2, %v438_v52  ;;  %v715_v60 = vpop.permute.xlu1 %714 }
 0x3cf   : > { %1010 = vmatpush3.bf16.xpose.msra.mxu1 %v496_v54  ;;  %1011 = vmatprep.mubr.msk.bf16.mxu1 %vm1301_vm1, %v1300_v14 }
 0x3d0   : > { %1021 = vmatprep.subr.bf16.mxu1 %v1300_v14 }
 0x3d6   : > { %1012 = vmatmul.mubr.msk.bf16.vlgmr.msra.gmra.mrb[4].mxu1 %vm380_vm2, %v488_v53 }
 0x3d7   : > { %1022 = vmatpush3.bf16.xpose.msra.mxu1 %v609_v56  ;;  %1023 = vmatprep.mubr.msk.bf16.mxu1 %vm1301_vm1, %v1300_v14 }
 0x3d8   : > { %1033 = vmatprep.subr.bf16.mxu1 %v1300_v14 }
 0x3de   : > { %1024 = vmatmul.mubr.msk.bf16.vlgmr.msra.gmra.mrb[8].mxu1 %vm380_vm2, %v602_v58 }
 0x3df   : > { %1034 = vmatpush3.bf16.xpose.msra.mxu1 %v722_v59  ;;  %1035 = vmatprep.mubr.msk.bf16.mxu1 %vm1301_vm1, %v1300_v14 }
 0x3e6   : > { %1036 = vmatmul.mubr.msk.bf16.vlgmr.msra.gmra.mrb[12].mxu1 %vm380_vm2, %v715_v60 }
 0x4a1   : > { %v479_v61 = vpop.f32.mrb[0].mxu1 }
 0x4a2   : > { %485 = vst.msk [vmem:[#allocation2] sm:$0xff] %vm380_vm2, %v479_v61  ;;  %v1007_v62 = vpop.f32.mrb[1].mxu1 }
 0x4a3   : > { %v482_v63 = vpop.f32.mrb[2].mxu1 }
 0x4a4   : > { %v1008_v0 = vpop.f32.mrb[3].mxu1 }
 0x4a9   : > { %v532_v1 = vpop.f32.mrb[4].mxu1 }
 0x4aa   : > { %v533_v2 = vadd.f32 %v532_v1, %v1567_v37  ;;  %v1013_v3 = vpop.f32.mrb[5].mxu1 }
 0x4ab   : > { %v535_v4 = vpop.f32.mrb[6].mxu1 }
 0x4ac   : > { %v1014_v5 = vpop.f32.mrb[7].mxu1  ;;  %v538_v6 = vsel %vm380_vm2, %v533_v2, -inf }
 0x4ad   : > { %539 = vmax.xlane.f32.xlu0 %v538_v6 }
 0x4b1   : > { %v645_v7 = vpop.f32.mrb[8].mxu1 }
 0x4b2   : > { %v646_v8 = vadd.f32 %v645_v7, %v1567_v37  ;;  %v1025_v9 = vpop.f32.mrb[9].mxu1 }
 0x4b3   : > { %v648_v10 = vpop.f32.mrb[10].mxu1 }
 0x4b4   : > { %v1026_v11 = vpop.f32.mrb[11].mxu1  ;;  %v651_v12 = vsel %vm380_vm2, %v646_v8, -inf }
 0x4b5   : > { %652 = vmax.xlane.f32.xlu1 %v651_v12 }
 0x4b9   : > { %v758_v13 = vpop.f32.mrb[12].mxu1 }
 0x4ba   : > { %v759_v15 = vadd.f32 %v758_v13, %v1567_v37  ;;  %v1037_v16 = vpop.f32.mrb[13].mxu1 }
 0x4bb   : > { %v761_v17 = vpop.f32.mrb[14].mxu1 }
 0x4bc   : > { %v1038_v18 = vpop.f32.mrb[15].mxu1  ;;  %v764_v19 = vsel %vm380_vm2, %v759_v15, -inf }
 0x4bd   : > { %765 = vmax.xlane.f32.xlu0 %v764_v19 }
 0x53a   : > { %v540_v20 = vpop.xlane.xlu0 %539 }
 0x53b   : > { %v541_v21 = vsub.f32 %v533_v2, %v540_v20 }
 0x53d   : > { %v542_v22 = vmul.f32 1.442695, %v541_v21 }
 0x53f   : > { %1121 = vpow2.f32 %v542_v22 }
 0x542   : > { %v653_v23 = vpop.xlane.xlu1 %652 }
 0x543   : > { %v654_v24 = vsub.f32 %v646_v8, %v653_v23 }
 0x545   : > { %v655_v25 = vmul.f32 1.442695, %v654_v24 }
 0x547   : > { %1123 = vpow2.f32 %v655_v25 }
 0x549   : > { %v1122_v26 = vpop.eup %1121 }
 0x54a   : > { %v766_v27 = vpop.xlane.xlu0 %765  ;;  %v544_v28 = vsel %vm380_vm2, %v1122_v26, 0.0 }
 0x54b   : > { %v767_v29 = vsub.f32 %v759_v15, %v766_v27  ;;  %545 = vadd.xlane.f32.xlu0 %v544_v28 }
 0x54d   : > { %v768_v30 = vmul.f32 1.442695, %v767_v29 }
 0x54f   : > { %1125 = vpow2.f32 %v768_v30 }
 0x551   : > { %v1124_v31 = vpop.eup %1123 }
 0x552   : > { %v657_v32 = vsel %vm380_vm2, %v1124_v31, 0.0 }
 0x553   : > { %658 = vadd.xlane.f32.xlu0 %v657_v32 }
 0x559   : > { %v1126_v33 = vpop.eup %1125 }
 0x55a   : > { %v770_v34 = vsel %vm380_vm2, %v1126_v33, 0.0 }
 0x55b   : > { %771 = vadd.xlane.f32.xlu1 %v770_v34 }
 0x5d8   : > { %v546_v35 = vpop.xlane.xlu0 %545 }
 0x5d9   : > { %1127 = vrcp.f32 %v546_v35 }
 0x5e0   : > { %v659_v36 = vpop.xlane.xlu0 %658 }
 0x5e1   : > { %1129 = vrcp.f32 %v659_v36 }
 0x5e3   : > { %v1128_v37 = vpop.eup %1127 }
 0x5e4   : > { %v548_v38 = vmul.f32 %v1128_v37, %v1122_v26 }
 0x5e6   : > { %v549_v39 = vpack.c.bf16 %v548_v38, %v548_v38 }
 0x5e8   : > { %1018 = vmatmul.mubr.msk.bf16.vlgmr.msra.gmra.mrb[4].mxu0 %vm380_vm2, %v549_v39  ;;  %v772_v41 = vpop.xlane.xlu1 %771 }
 0x5e9   : > { %1028 = vmatpush3.bf16.msra.mxu0 %v666_v40  ;;  %1131 = vrcp.f32 %v772_v41  ;;  %1029 = vmatprep.mubr.msk.bf16.mxu0 %vm1301_vm1, %v1300_v14 }
 0x5ea   : > { %1039 = vmatprep.subr.bf16.mxu0 %v1300_v14 }
 0x5eb   : > { %v1130_v42 = vpop.eup %1129 }
 0x5ec   : > { %v661_v43 = vmul.f32 %v1130_v42, %v1124_v31 }
 0x5ee   : > { %v662_v44 = vpack.c.bf16 %v661_v43, %v661_v43 }
 0x5f0   : > { %1030 = vmatmul.mubr.msk.bf16.vlgmr.msra.gmra.mrb[8].mxu0 %vm380_vm2, %v662_v44 }
 0x5f1   : > { %1040 = vmatpush3.bf16.msra.mxu0 %v779_v45  ;;  %1041 = vmatprep.mubr.msk.bf16.mxu0 %vm1301_vm1, %v1300_v14 }
 0x5f3   : > { %v1132_v46 = vpop.eup %1131 }
 0x5f4   : > { %v774_v47 = vmul.f32 %v1132_v46, %v1126_v33 }
 0x5f6   : > { %v775_v48 = vpack.c.bf16 %v774_v47, %v774_v47 }
 0x5f8   : > { %1042 = vmatmul.mubr.msk.bf16.vlgmr.msra.gmra.mrb[12].mxu0 %vm380_vm2, %v775_v48 }
 0x6bb   : > { %v589_v49 = vpop.f32.mrb[4].mxu0 }
 0x6bc   : > { %596 = vrot.lane.b32.xlu0 %v589_v49, %s1305_s14  ;;  %v1019_v50 = vpop.f32.mrb[5].mxu0 }
 0x6bd   : > { %v592_v51 = vpop.f32.mrb[6].mxu0 }
 0x6be   : > { %v1020_v52 = vpop.f32.mrb[7].mxu0 }
 0x6c3   : > { %v702_v53 = vpop.f32.mrb[8].mxu0 }
 0x6c4   : > { %709 = vrot.lane.b32.xlu1 %v702_v53, %s1306_s27  ;;  %v1031_v54 = vpop.f32.mrb[9].mxu0 }
 0x6c5   : > { %v705_v55 = vpop.f32.mrb[10].mxu0 }
 0x6c6   : > { %v1032_v56 = vpop.f32.mrb[11].mxu0 }
 0x6cb   : > { %v815_v57 = vpop.f32.mrb[12].mxu0 }
 0x6cc   : > { %822 = vrot.lane.b32.xlu1 %v815_v57, %s1307_s16  ;;  %v1043_v14 = vpop.f32.mrb[13].mxu0 }
 0x6cd   : > { %v818_v58 = vpop.f32.mrb[14].mxu0 }
 0x6ce   : > { %v1044_v59 = vpop.f32.mrb[15].mxu0 }
 0x72e   : > { %v597_v60 = vpop.permute.xlu0 %596 }
 0x72f   : > { %600 = vst.msk [vmem:[#allocation2] sm:$0xff] %vm599_vm4, %v597_v60 }
 0x736   : > { %v710_v61 = vpop.permute.xlu1 %709 }
 0x737   : > { %713 = vst.msk [vmem:[#allocation2] sm:$0xff] %vm712_vm5, %v710_v61 }
 0x73e   : > { %v823_v62 = vpop.permute.xlu1 %822 }
 0x73f   : > { %826 = vst.msk [vmem:[#allocation2] sm:$0xff] %vm825_vm6, %v823_v62 }
 0x746   : > { %v827_v63 = vld [vmem:[#allocation2] sm:$0xff] }
 0x747   : > { %v828_v0 = vpack.c.bf16 %v827_v63, %v827_v63 }
 0x749   : > { %830 = vst.msk [vmem:[%s324_s7] sm:$0xf] %vm829_vm7, %v828_v0 }
 0x74a   : > { %1234 = shalt.err (!%p1231_p8)
}
 0x74b   : > { %s1235_s12 = scalar_lea.hbm %s1622_s26, 64  ;;  %s1239_s27 = scalar_lea.hbm %s1673_s6, 128 }
 0x74c   : > { %p1236_p7 = scmp.ne.s32.totalorder %s1622_s26, %s1235_s12  ;;  %p1240_p9 = scmp.lt.u32.totalorder %s1622_s26, %s1673_s6 }
 0x74d   : > { %p1241_p0 = scmp.lt.u32.totalorder %s1239_s27, %s1235_s12  ;;  %p1243_p12 = scmp.lt.u32.totalorder %s1235_s12, %s1622_s26 }
 0x74e   : > { %p1237_p4 = pnand %p1236_p7, %p1692_p1 }
 0x74f   : > { %p1242_p6 = por %p1241_p0, %p1240_p9 }
 0x750   : > { %p1238_p10 = pneg %p1237_p4 }
 0x751   : > { %p1244_p11 = por %p1243_p12, %p1242_p6 }
 0x753   : > { %p1245_p13 = pnand %p1244_p11, %p1238_p10 }
 0x755   : > { %1248 = shalt.err (!%p1245_p13)
}
 0x756   : > { %1053 = dma.vmem_to_hbm [thread:$0]  (%p1692_p1), %s1624_s20, 64, %s1622_s26, %s832_s29  }
 0x757 PF: > { %s857_s7 = sand.u32 1, %s1283_s21   ;;  %p1693_p3 = scmp.ne.s32.totalorder %s1682_s13, 0 }
 0x758   : > { %p1694_p2 = scmp.ge.s32.totalorder %s1295_s24, 2  ;;  %s858_s15 = scalar_lea.sflag [#allocation5], %s857_s7 }
 0x75a   : > { %p1067_p5 = pnand %p1694_p2, %p1693_p3 }
 0x75c   : > { %1278 = dma.done.wait (!%p1067_p5), %s858_s15, 64  }
 0x75d   : > { %1280 = vsyncadd (!%p1067_p5), %s858_s15, 4294967232  ;;  %p20_p8 = scmp.ge.s32.totalorder %s1365_s25, 4   ;;  %s1695_s21 = smov %s1287_s22 }
 0x75e   : > { %s1696_s22 = smov %s1291_s23  ;;  %s1697_s23 = smov %s1376_s28 }
 0x75f   : > { %s1698_s24 = smov %s1365_s25  ;;  %22 = sbr.rel (!%p20_p8) target bundleno = 6 (0x6), region = 107 }
 0x766   :  { %863 = vsyncpa [#allocation4], 1 }
 0x767   :  { %865 = vsyncpa [#allocation4 + $0x1], 1 }
 0x768   :  { %866 = vsyncpa [#allocation7], 1 }
 0x769   :  { %867 = vsyncpa [#allocation5], 1 }
 0x76a   :  { %869 = vsyncpa [#allocation5 + $0x1], 1 }

</bundles_post_ra>
